<compile_context>
chip_gen: v6e
topology: v6e:2x2x1
jax: 0.10.0
libtpu: 0.0.40
codegen_flags: <defaults>
</compile_context>

<pallas_src>
import jax
import jax.numpy as jnp
import numpy as np
from jax.experimental import pallas as pl
from jax.experimental.pallas import tpu as pltpu

NEG_SLOPE = 0.01
BN_EPS = 1e-5
DEFAULT_TILE_N = 1024  # lane-dense batch tile (multiple of 256)


def _leaky_relu(h):
    return jnp.where(h > 0, h, NEG_SLOPE * h)


def mlp_kernel(xT_ref, w1_ref, w234_ref, w5_ref, b_ref, oT_ref):
    """One batch tile (columns) through the whole 5-layer MLP, transposed layout.

    xT_ref:   (in, T)    f32  (cast to bf16 in-kernel; saves a wrapper HBM pass)
    w1_ref:   (H, in)    bf16, BN1 scale folded in (PyTorch (out, in) layout)
    w234_ref: (3, H, H)  bf16, BN2..4 scales folded in
    w5_ref:   (out, H)   bf16
    b_ref:    (H, 4)     f32 per-layer BN shifts (column l = layer l+1 shift)
    oT_ref:   (out, T)   f32  -- batch on lanes => unmasked, lane-dense stores
    """
    xT = xT_ref[...].astype(jnp.bfloat16)                       # free VPU cast

    # layer 1: fc1 -> folded-BN shift -> LeakyReLU (dropout = identity, eval)
    h = jnp.dot(w1_ref[...], xT, preferred_element_type=jnp.float32)   # (H, T)
    h = _leaky_relu(h + b_ref[:, 0:1])

    # layers 2..4 (weights stacked along leading axis, static unroll)
    for l in range(3):
        h = jnp.dot(w234_ref[l], h.astype(jnp.bfloat16),
                    preferred_element_type=jnp.float32)
        h = _leaky_relu(h + b_ref[:, l + 1:l + 2])

    # layer 5: fc5 only (no BN / activation / dropout)
    oT_ref[...] = jnp.dot(w5_ref[...], h.astype(jnp.bfloat16),
                          preferred_element_type=jnp.float32)


def _choose_tile_n(N, tile_n):
    """Lane-dense batch tile: multiple of 256 (full v6e/v7x MXU N width) and at
    least 2 grid steps whenever N allows, so both v7x TensorCores get work."""
    if N <= 256:
        return N                                    # single full-extent block
    t = min(tile_n, 256 * pl.cdiv(pl.cdiv(N, 2), 256))
    return max(256, (t // 256) * 256)


def mlp_forward(x, params, *, tile_n=DEFAULT_TILE_N):
    """x: (N, in_channels) float32. Returns (N, out_channels) float32."""
    N, in_ch = x.shape
    H = params["w1"].shape[0]
    out_ch = params["w5"].shape[0]

    tile = _choose_tile_n(N, tile_n)
    grid = (pl.cdiv(N, tile),)

    # Feature-major view so the batch dimension sits on the lane axis inside
    # the kernel. The bf16 cast happens in-kernel (no extra wrapper HBM pass).
    xT = x.T  # (in_ch, N) f32

    flops = 2 * N * (in_ch * H + 3 * H * H + H * out_ch)
    bytes_accessed = (N * in_ch * 4                                  # x (f32)
                      + (in_ch * H + 3 * H * H + H * out_ch) * 2     # bf16 weights
                      + 4 * H * 4                                    # shifts (f32)
                      + N * out_ch * 4)                              # output (f32)

    # VMEM budget: resident weights (double-buffered by default) + streamed
    # x/out tiles (double-buffered). At H=32 this is far below the 32 MiB
    # default; for very large H, stream weight tiles via a grid axis instead.
    resident = 2 * (in_ch * H + 3 * H * H + H * out_ch) + 4 * H * 4
    streamed = 2 * (in_ch + out_ch) * tile * 4
    vmem_limit = int(min(96 * 1024 * 1024,
                         max(32 * 1024 * 1024, 2 * (2 * resident + streamed))))

    oT = pl.pallas_call(
        mlp_kernel,
        out_shape=jax.ShapeDtypeStruct((out_ch, N), jnp.float32),
        grid=grid,
        in_specs=[
            pl.BlockSpec((in_ch, tile), lambda i: (0, i)),   # x tile, batch on lanes
            pl.BlockSpec((H, in_ch), lambda i: (0, 0)),      # w1, VMEM-resident
            pl.BlockSpec((3, H, H), lambda i: (0, 0, 0)),    # w2..w4, VMEM-resident
            pl.BlockSpec((out_ch, H), lambda i: (0, 0)),     # w5, VMEM-resident
            pl.BlockSpec((H, 4), lambda i: (0, 0)),          # shifts, VMEM-resident
        ],
        out_specs=pl.BlockSpec((out_ch, tile), lambda i: (0, i)),
        compiler_params=pltpu.CompilerParams(
            dimension_semantics=("parallel",),
            vmem_limit_bytes=vmem_limit),
        cost_estimate=pl.CostEstimate(flops=flops, transcendentals=0,
                                      bytes_accessed=bytes_accessed),
    )(xT, params["w1"], params["w234"], params["w5"], params["b"])

    return oT.T  # back to (N, out_ch)


def make_params(key, in_channels, hidden_channels, out_channels):
    """Deterministic synthetic parameters matching MLPModel.__init__ shapes.
    Inference-mode BN is folded: scale into the weights (row-wise, PyTorch
    (out, in) layout), shift kept.  Also returns raw f32 params for a
    full-precision reference check."""
    ks = jax.random.split(key, 16)
    dims = ([(in_channels, hidden_channels)]
            + [(hidden_channels, hidden_channels)] * 3
            + [(hidden_channels, out_channels)])

    raw_w = []
    for i, (din, dout) in enumerate(dims):
        # nn.Linear weight layout is (out_features, in_features).
        w = jax.random.uniform(ks[i], (dout, din), jnp.float32,
                               minval=-1.0, maxval=1.0) / np.sqrt(din)
        raw_w.append(w)

    gammas, betas, means, variances, scales, shifts = [], [], [], [], [], []
    for i in range(4):  # BatchNorm1d after fc1..fc4 (inference / running stats)
        kg, kb, km, kv = jax.random.split(ks[5 + i], 4)
        gamma = 1.0 + 0.1 * jax.random.normal(kg, (hidden_channels,), jnp.float32)
        beta = 0.1 * jax.random.normal(kb, (hidden_channels,), jnp.float32)
        mean = 0.1 * jax.random.normal(km, (hidden_channels,), jnp.float32)
        var = jnp.abs(1.0 + 0.1 * jax.random.normal(
            kv, (hidden_channels,), jnp.float32))
        scale = gamma / jnp.sqrt(var + BN_EPS)
        shift = beta - mean * scale
        gammas.append(gamma); betas.append(beta); means.append(mean)
        variances.append(var); scales.append(scale); shifts.append(shift)

    # Fold BN scale into the preceding Linear weight (row-wise), cast to bf16.
    w_folded = [raw_w[i] * scales[i][:, None] for i in range(4)] + [raw_w[4]]

    params = {
        "w1": w_folded[0].astype(jnp.bfloat16),                    # (H, in)
        "w234": jnp.stack(w_folded[1:4], 0).astype(jnp.bfloat16),  # (3, H, H)
        "w5": w_folded[4].astype(jnp.bfloat16),                    # (out, H)
        "b": jnp.stack(shifts, axis=1).astype(jnp.float32),        # (H, 4)
    }
    ref_f32 = {"w": raw_w, "gamma": gammas, "beta": betas,
               "mean": means, "var": variances}
    return params, ref_f32


def mlp_reference_bf16(x, params):
    """Pure-JAX reference using the same bf16-matmul / f32-epilogue recipe."""
    def lin(h, w):  # w: (out, in) bf16
        return jnp.dot(h.astype(jnp.bfloat16), w.T,
                       preferred_element_type=jnp.float32)
    z = lin(x, params["w1"]) + params["b"][:, 0]
    h = jnp.where(z > 0, z, NEG_SLOPE * z)
    for l in range(3):
        z = lin(h, params["w234"][l]) + params["b"][:, l + 1]
        h = jnp.where(z > 0, z, NEG_SLOPE * z)
        # dropout: identity in eval mode
    return lin(h, params["w5"])


def mlp_reference_f32(x, ref):
    """Full-f32 reference with unfolded BatchNorm (matches PyTorch eval math)."""
    h = x
    for l in range(4):
        h = h @ ref["w"][l].T
        h = ((h - ref["mean"][l]) / jnp.sqrt(ref["var"][l] + BN_EPS)
             * ref["gamma"][l] + ref["beta"][l])
        h = jnp.where(h > 0, h, NEG_SLOPE * h)
    return h @ ref["w"][4].T


if __name__ == "__main__":
    # Small shapes consistent with the module; N=512 gives 2 lane-dense
    # 256-wide grid steps (exercises the grid + both v7x TensorCores).
    N, in_channels, hidden_channels, out_channels = 512, 8, 32, 4

    key = jax.random.PRNGKey(0)
    kx, kp = jax.random.split(key)
    x = jax.random.normal(kx, (N, in_channels), jnp.float32)
    params, ref_f32 = make_params(kp, in_channels, hidden_channels, out_channels)

    out = jax.block_until_ready(mlp_forward(x, params))

    # Same-recipe reference (bf16 matmuls, f32 epilogue): tight tolerance.
    ref_b = mlp_reference_bf16(x, params)
    np.testing.assert_allclose(np.asarray(out), np.asarray(ref_b),
                               rtol=2e-4, atol=2e-4)

    # Full-f32 unfolded-BN reference: validates bf16 weight casting stays
    # within accuracy budget of the true f32 PyTorch math.
    ref_f = mlp_reference_f32(x, ref_f32)
    np.testing.assert_allclose(np.asarray(out), np.asarray(ref_f),
                               rtol=5e-2, atol=5e-2)

    # TODO(synk): training-mode BatchNorm (batch statistics) and stochastic
    # dropout are not implemented; forward uses eval-mode (inference) semantics.
    print("KERNEL_OK")
</pallas_src>

<mosaic_0001>
module attributes {stable_mosaic.version = 11 : i64} {
  func.func @mlp_kernel(%arg0: i32, %arg1: memref<8x256xf32, #tpu.memory_space<vmem>>, %arg2: memref<32x8xbf16, #tpu.memory_space<vmem>>, %arg3: memref<3x32x32xbf16, #tpu.memory_space<vmem>>, %arg4: memref<4x32xbf16, #tpu.memory_space<vmem>>, %arg5: memref<32x4xf32, #tpu.memory_space<vmem>>, %arg6: memref<4x256xf32, #tpu.memory_space<vmem>>) attributes {dimension_semantics = [#tpu.dimension_semantics<parallel>], iteration_bounds = array<i64: 2>, scalar_prefetch = 0 : i64, scratch_operands = 0 : i64, tpu.core_type = #tpu.core_type<tc>, window_params = [{transform_indices = @transform_0, window_bounds = array<i64: 8, 256>}, {pipeline_mode = #tpu.pipeline_mode<synchronous>, transform_indices = @transform_1, window_bounds = array<i64: 32, 8>}, {pipeline_mode = #tpu.pipeline_mode<synchronous>, transform_indices = @transform_2, window_bounds = array<i64: 3, 32, 32>}, {pipeline_mode = #tpu.pipeline_mode<synchronous>, transform_indices = @transform_3, window_bounds = array<i64: 4, 32>}, {pipeline_mode = #tpu.pipeline_mode<synchronous>, transform_indices = @transform_4, window_bounds = array<i64: 32, 4>}, {transform_indices = @transform_5, window_bounds = array<i64: 4, 256>}]} {
    %c0 = arith.constant 0 : index
    %c0_0 = arith.constant 0 : index
    %0 = vector.load %arg1[%c0, %c0_0] : memref<8x256xf32, #tpu.memory_space<vmem>>, vector<8x256xf32>
    %1 = arith.truncf %0 : vector<8x256xf32> to vector<8x256xbf16>
    %c0_1 = arith.constant 0 : index
    %c0_2 = arith.constant 0 : index
    %2 = vector.load %arg2[%c0_1, %c0_2] : memref<32x8xbf16, #tpu.memory_space<vmem>>, vector<32x8xbf16>
    %cst = arith.constant dense<0.000000e+00> : vector<32x256xf32>
    %3 = tpu.matmul %2, %1, %cst {dimension_numbers = #tpu.dot_dimension_numbers<[1], [0], [0], [1], [0, 0, 1, 1], [], []>} : vector<32x8xbf16>, vector<8x256xbf16>, vector<32x256xf32> -> vector<32x256xf32>
    %c0_3 = arith.constant 0 : index
    %c0_4 = arith.constant 0 : index
    %4 = vector.load %arg5[%c0_3, %c0_4] : memref<32x4xf32, #tpu.memory_space<vmem>>, vector<32x1xf32>
    %5 = vector.broadcast %4 : vector<32x1xf32> to vector<32x256xf32>
    %6 = arith.addf %3, %5 : vector<32x256xf32>
    %cst_5 = arith.constant 0.000000e+00 : f32
    %7 = vector.broadcast %cst_5 : f32 to vector<32x256xf32>
    %8 = arith.cmpf ogt, %6, %7 : vector<32x256xf32>
    %cst_6 = arith.constant 0.00999999977 : f32
    %9 = vector.broadcast %cst_6 : f32 to vector<32x256xf32>
    %10 = arith.mulf %9, %6 : vector<32x256xf32>
    %11 = arith.select %8, %6, %10 : vector<32x256xi1>, vector<32x256xf32>
    %c0_7 = arith.constant 0 : index
    %c0_8 = arith.constant 0 : index
    %c0_9 = arith.constant 0 : index
    %12 = vector.load %arg3[%c0_7, %c0_8, %c0_9] : memref<3x32x32xbf16, #tpu.memory_space<vmem>>, vector<1x32x32xbf16>
    %13 = vector.shape_cast %12 : vector<1x32x32xbf16> to vector<32x32xbf16>
    %14 = arith.truncf %11 : vector<32x256xf32> to vector<32x256xbf16>
    %cst_10 = arith.constant dense<0.000000e+00> : vector<32x256xf32>
    %15 = tpu.matmul %13, %14, %cst_10 {dimension_numbers = #tpu.dot_dimension_numbers<[1], [0], [0], [1], [0, 0, 1, 1], [], []>} : vector<32x32xbf16>, vector<32x256xbf16>, vector<32x256xf32> -> vector<32x256xf32>
    %c0_11 = arith.constant 0 : index
    %c1 = arith.constant 1 : index
    %16 = vector.load %arg5[%c0_11, %c1] : memref<32x4xf32, #tpu.memory_space<vmem>>, vector<32x1xf32>
    %17 = vector.broadcast %16 : vector<32x1xf32> to vector<32x256xf32>
    %18 = arith.addf %15, %17 : vector<32x256xf32>
    %cst_12 = arith.constant 0.000000e+00 : f32
    %19 = vector.broadcast %cst_12 : f32 to vector<32x256xf32>
    %20 = arith.cmpf ogt, %18, %19 : vector<32x256xf32>
    %cst_13 = arith.constant 0.00999999977 : f32
    %21 = vector.broadcast %cst_13 : f32 to vector<32x256xf32>
    %22 = arith.mulf %21, %18 : vector<32x256xf32>
    %23 = arith.select %20, %18, %22 : vector<32x256xi1>, vector<32x256xf32>
    %c1_14 = arith.constant 1 : index
    %c0_15 = arith.constant 0 : index
    %c0_16 = arith.constant 0 : index
    %24 = vector.load %arg3[%c1_14, %c0_15, %c0_16] : memref<3x32x32xbf16, #tpu.memory_space<vmem>>, vector<1x32x32xbf16>
    %25 = vector.shape_cast %24 : vector<1x32x32xbf16> to vector<32x32xbf16>
    %26 = arith.truncf %23 : vector<32x256xf32> to vector<32x256xbf16>
    %cst_17 = arith.constant dense<0.000000e+00> : vector<32x256xf32>
    %27 = tpu.matmul %25, %26, %cst_17 {dimension_numbers = #tpu.dot_dimension_numbers<[1], [0], [0], [1], [0, 0, 1, 1], [], []>} : vector<32x32xbf16>, vector<32x256xbf16>, vector<32x256xf32> -> vector<32x256xf32>
    %c0_18 = arith.constant 0 : index
    %c2 = arith.constant 2 : index
    %28 = vector.load %arg5[%c0_18, %c2] : memref<32x4xf32, #tpu.memory_space<vmem>>, vector<32x1xf32>
    %29 = vector.broadcast %28 : vector<32x1xf32> to vector<32x256xf32>
    %30 = arith.addf %27, %29 : vector<32x256xf32>
    %cst_19 = arith.constant 0.000000e+00 : f32
    %31 = vector.broadcast %cst_19 : f32 to vector<32x256xf32>
    %32 = arith.cmpf ogt, %30, %31 : vector<32x256xf32>
    %cst_20 = arith.constant 0.00999999977 : f32
    %33 = vector.broadcast %cst_20 : f32 to vector<32x256xf32>
    %34 = arith.mulf %33, %30 : vector<32x256xf32>
    %35 = arith.select %32, %30, %34 : vector<32x256xi1>, vector<32x256xf32>
    %c2_21 = arith.constant 2 : index
    %c0_22 = arith.constant 0 : index
    %c0_23 = arith.constant 0 : index
    %36 = vector.load %arg3[%c2_21, %c0_22, %c0_23] : memref<3x32x32xbf16, #tpu.memory_space<vmem>>, vector<1x32x32xbf16>
    %37 = vector.shape_cast %36 : vector<1x32x32xbf16> to vector<32x32xbf16>
    %38 = arith.truncf %35 : vector<32x256xf32> to vector<32x256xbf16>
    %cst_24 = arith.constant dense<0.000000e+00> : vector<32x256xf32>
    %39 = tpu.matmul %37, %38, %cst_24 {dimension_numbers = #tpu.dot_dimension_numbers<[1], [0], [0], [1], [0, 0, 1, 1], [], []>} : vector<32x32xbf16>, vector<32x256xbf16>, vector<32x256xf32> -> vector<32x256xf32>
    %c0_25 = arith.constant 0 : index
    %c3 = arith.constant 3 : index
    %40 = vector.load %arg5[%c0_25, %c3] : memref<32x4xf32, #tpu.memory_space<vmem>>, vector<32x1xf32>
    %41 = vector.broadcast %40 : vector<32x1xf32> to vector<32x256xf32>
    %42 = arith.addf %39, %41 : vector<32x256xf32>
    %cst_26 = arith.constant 0.000000e+00 : f32
    %43 = vector.broadcast %cst_26 : f32 to vector<32x256xf32>
    %44 = arith.cmpf ogt, %42, %43 : vector<32x256xf32>
    %cst_27 = arith.constant 0.00999999977 : f32
    %45 = vector.broadcast %cst_27 : f32 to vector<32x256xf32>
    %46 = arith.mulf %45, %42 : vector<32x256xf32>
    %47 = arith.select %44, %42, %46 : vector<32x256xi1>, vector<32x256xf32>
    %c0_28 = arith.constant 0 : index
    %c0_29 = arith.constant 0 : index
    %48 = vector.load %arg4[%c0_28, %c0_29] : memref<4x32xbf16, #tpu.memory_space<vmem>>, vector<4x32xbf16>
    %49 = arith.truncf %47 : vector<32x256xf32> to vector<32x256xbf16>
    %cst_30 = arith.constant dense<0.000000e+00> : vector<4x256xf32>
    %50 = tpu.matmul %48, %49, %cst_30 {dimension_numbers = #tpu.dot_dimension_numbers<[1], [0], [0], [1], [0, 0, 1, 1], [], []>} : vector<4x32xbf16>, vector<32x256xbf16>, vector<4x256xf32> -> vector<4x256xf32>
    %c0_31 = arith.constant 0 : index
    %c0_32 = arith.constant 0 : index
    %51 = vector.load %arg6[%c0_31, %c0_32] : memref<4x256xf32, #tpu.memory_space<vmem>>, vector<4x256xf32>
    tpu.vector_store %arg6[%c0_31, %c0_32], %50 {strides = array<i32>} : memref<4x256xf32, #tpu.memory_space<vmem>>, vector<4x256xf32>,
    return
  }
  func.func @transform_0(%arg0: i32) -> (i32, i32) {
    %c0_i32 = arith.constant 0 : i32
    %c0_i32_0 = arith.constant 0 : i32
    return %c0_i32, %arg0 : i32, i32
  }
  func.func @transform_1(%arg0: i32) -> (i32, i32) {
    %c0_i32 = arith.constant 0 : i32
    %c0_i32_0 = arith.constant 0 : i32
    %c0_i32_1 = arith.constant 0 : i32
    return %c0_i32, %c0_i32_0 : i32, i32
  }
  func.func @transform_2(%arg0: i32) -> (i32, i32, i32) {
    %c0_i32 = arith.constant 0 : i32
    %c0_i32_0 = arith.constant 0 : i32
    %c0_i32_1 = arith.constant 0 : i32
    %c0_i32_2 = arith.constant 0 : i32
    return %c0_i32, %c0_i32_0, %c0_i32_1 : i32, i32, i32
  }
  func.func @transform_3(%arg0: i32) -> (i32, i32) {
    %c0_i32 = arith.constant 0 : i32
    %c0_i32_0 = arith.constant 0 : i32
    %c0_i32_1 = arith.constant 0 : i32
    return %c0_i32, %c0_i32_0 : i32, i32
  }
  func.func @transform_4(%arg0: i32) -> (i32, i32) {
    %c0_i32 = arith.constant 0 : i32
    %c0_i32_0 = arith.constant 0 : i32
    %c0_i32_1 = arith.constant 0 : i32
    return %c0_i32, %c0_i32_0 : i32, i32
  }
  func.func @transform_5(%arg0: i32) -> (i32, i32) {
    %c0_i32 = arith.constant 0 : i32
    %c0_i32_0 = arith.constant 0 : i32
    return %c0_i32, %arg0 : i32, i32
  }
}

</mosaic_0001>

<bundles_post_ra>
// kernel: tpu_custom_call.1
= control target key start
LH: loop header
LB: loop body
LE: loop exit
PB: predicated region body
PF: predicated region fallthrough
CT: control target
= control target key end

     0   :  { %10 = vsyncpa [#allocation3], 0  ;;  %s1343_s0 = inlined_call_operand.hbm [shape: f32[8,512], index: 0, kind: input, shape index: {}]   ;;  %s1344_s1 = inlined_call_operand.vmem [shape: bf16[32,8], index: 1, kind: input, shape index: {}]   ;;  %s1345_s2 = inlined_call_operand.vmem [shape: bf16[3,32,32], index: 2, kind: input, shape index: {}]   ;;  %s1346_s3 = inlined_call_operand.vmem [shape: bf16[4,32], index: 3, kind: input, shape index: {}]   ;;  %s1347_s4 = inlined_call_operand.vmem [shape: f32[32,4], index: 4, kind: input, shape index: {}]   ;;  %s1348_s5 = inlined_call_operand.hbm [shape: f32[4,512], index: 5, kind: output, shape index: {}]  }
   0x1   :  { %12 = vsyncpa [#allocation3 + $0x1], 0 }
   0x2   :  { %13 = vsyncpa [#allocation4], 0 }
   0x3   :  { %15 = vsyncpa [#allocation4 + $0x1], 0  ;;  %s1108_s18 = smov 0   ;;  %s1110_s19 = smov 0  }
   0x4   :  { %s1112_s20 = smov 0   ;;  %s1114_s21 = smov 0  }
   0x5 LB: > { %s1129_s22 = sadd.s32 4294967295, %s1070_s21   ;;  %s870_s23 = sadd.s32 4294967294, %s1070_s21   ;;  %s1070_s21 = sphi %s1114_s21, %s1365_s21   ;;  %s1066_s20 = sphi %s1112_s20, %s1364_s20   ;;  %s1062_s19 = sphi %s1110_s19, %s1363_s19   ;;  %s1058_s18 = sphi %s1108_s18, %s1362_s18  }
   0x6   : > { %s1133_s24 = sadd.s32 1, %s1070_s21   ;;  %s28_s25 = sadd.s32 1, %s1066_s20 }
   0x7   : > { %s25_s26 = ssub.s32 %s1070_s21, %s1133_s24  ;;  %p35_p0 = scmp.ne.s32.totalorder %s1066_s20, %s1062_s19 }
   0x8   : > { %p26_p1 = scmp.eq.s32.totalorder %s25_s26, 0  ;;  %p36_p2 = scmp.eq.s32.totalorder %s1070_s21, 0 }
   0x9   : > { %p41_p3 = scmp.ne.s32.totalorder %s1062_s19, %s1058_s18  ;;  %p42_p4 = scmp.eq.s32.totalorder %s1129_s22, 0 }
   0xa   : > { %s1145_s27 = scalar_select %p26_p1, %s1066_s20, %s28_s25  }
   0xb   : > { %p1147_p5 = por %p36_p2, %p35_p0  ;;  %p1151_p6 = por %p42_p4, %p41_p3 }
   0xc   : > { %p149_p7 = scmp.eq.s32.totalorder %s1129_s22, 1  ;;  %p155_p8 = scmp.eq.s32.totalorder %s870_s23, 1 }
   0xd   : > { %s1352_s29 = scalar_select %p1151_p6, 1, 0 }
   0xe   : > { %p924_p10 = scmp.lt.s32.totalorder %s1070_s21, 2  ;;  %p1158_p11 = por %p149_p7, %p35_p0 }
   0xf   : > { %p1162_p12 = por %p155_p8, %p41_p3  ;;  %s187_s7 = sand.u32 1, %s1066_s20  }
  0x10   : > { %s1353_s30 = scalar_select %p1158_p11, 1, 0 }
  0x11   : > { %s1354_s6 = scalar_select %p1162_p12, 1, 0 }
  0x12   : > { %s910_s8 = sshll.u32 %s1070_s21, 8  ;;  %s873_s9 = sshll.u32 %s187_s7, 4 }
  0x13   : > { %s1171_s12 = scalar_lea.hbm %s1343_s0, %s910_s8  ;;  %s191_s13 = scalar_lea.vmem [#allocation2], %s873_s9 }
  0x14   : > { %s199_s14 = sshll.u32 %s191_s13, 4  ;;  %p1175_p13 = pnand %p924_p10, %p1147_p5  ;;  %s1179_s14 = int_to_ptr.vmem [resolvable:$true] %s199_s14 }
  0x15   : > { %s188_s16 = scalar_lea.sflag [#allocation3], %s187_s7  ;;  %s978_s17 = scalar_lea.hbm %s1171_s12, 256 }
  0x16   : > { %p979_p2 = scmp.ne.s32.totalorder %s1171_s12, %s978_s17  ;;  %p980_p3 = pneg %p1175_p13 }
  0x17   : > { %s983_s26 = scalar_lea.hbm %s1343_s0, 512  ;;  %p984_p5 = scmp.lt.s32.totalorder %s1171_s12, %s1343_s0 }
  0x18   : > { %p981_p4 = pnand %p980_p3, %p979_p2  ;;  %p985_p8 = scmp.lt.s32.totalorder %s983_s26, %s978_s17 }
  0x1a   : > { %p982_p7 = pneg %p981_p4  ;;  %p986_p10 = por %p985_p8, %p984_p5 }
  0x1c   : > { %p987_p9 = pnand %p986_p10, %p982_p7 }
  0x1e   : > { %990 = shalt.err (!%p987_p9)
}
  0x1f   : > { %s991_s7 = scalar_lea.vmem %s1179_s14, 256  ;;  %s1072_s9 = smov [#allocation2]  }
  0x20   : > { %p992_p0 = scmp.ne.s32.totalorder %s1179_s14, %s991_s7  ;;  %s996_s10 = sshll.u32 %s1072_s9, 4  ;;  %s997_s10 = int_to_ptr.vmem [resolvable:$false] %s996_s10 }
  0x21   : > { %s998_s11 = scalar_lea.vmem %s997_s10, 512  ;;  %p999_p4 = scmp.lt.s32.totalorder %s1179_s14, %s997_s10 }
  0x22   : > { %p994_p1 = pnand %p992_p0, %p980_p3  ;;  %p1000_p12 = scmp.lt.s32.totalorder %s998_s11, %s991_s7 }
  0x24   : > { %p995_p2 = pneg %p994_p1  ;;  %p1001_p11 = por %p1000_p12, %p999_p4 }
  0x26   : > { %p1002_p6 = pnand %p1001_p11, %p995_p2 }
  0x28   : > { %1005 = shalt.err (!%p1002_p6)
}
  0x29   : > { %919 = dma.hbm_to_vmem [thread:$0]  (!%p1175_p13), %s1171_s12, 256, %s1179_s14, %s188_s16  }
  0x2a   : > { %p1356_p9 = scmp.lt.s32.totalorder %s1070_s21, 3  ;;  %p1357_p7 = scmp.ge.s32.totalorder %s1070_s21, 1 }
  0x2c   : > { %p205_p0 = pnand %p1357_p7, %p1356_p9 }
  0x2d   : > { %s1206_s13 = sand.u32 (!%p205_p0), 1, %s1062_s19   ;;  %p1358_p6 = scmp.ne.s32.totalorder (!%p205_p0), %s1352_s29, 0 }
  0x2e   : > { %208 = sbr.rel (%p205_p0) target bundleno = 1158 (0x486), region = 40  ;;  %s877_s17 = sshll.u32 (!%p205_p0), %s1206_s13, 4 }
  0x2f   : > { %s211_s23 = scalar_lea.sflag (!%p205_p0), [#allocation3], %s1206_s13  ;;  %s214_s25 = scalar_lea.vmem (!%p205_p0), [#allocation2], %s877_s17 }
  0x33   : > { %1049 = dma.done.wait (%p1358_p6), %s211_s23, 256  }
  0x34   : > { %1051 = vsyncadd (%p1358_p6), %s211_s23, 4294967040  ;;  %v1073_v0 = vmov 0   ;;  %v245_v1 = vld [vmem:[%s214_s25 + $0x8] sm:$0xff]  ;;  %vm293_vm0 = vcmask 1043456   ;;  %v244_v2 = vld [vmem:[%s214_s25] sm:$0xff]  ;;  %vm286_vm1 = vcmask 64512  }
  0x35   : > { %332 = vmatprep.mubr.bf16.mxu0 %v1073_v0  ;;  %963 = vset.pattern.permute.xlu1 %v1073_v0  ;;  %v247_v3 = vpack.c.bf16 %v245_v1, %v245_v1  ;;  %v246_v4 = vpack.c.bf16 %v244_v2, %v244_v2  ;;  %v970_v5 = vld [vmem:[%s1344_s1] sm:$0xff]   ;;  %v1230_v8 = vld [vmem:[%s1347_s4 + $0x8] sm:$0xff]  ;;  %v1235_v9 = vld [vmem:[%s1347_s4 + $0x10] sm:$0xff]  ;;  %v1074_v12 = vmov 1   ;;  %vm411_vm10 = vcmask 261120   ;;  %s878_s11 = sshll.u32 %s1206_s13, 3 }
  0x36   : > { %962 = vset.pattern.permute.xlu0 %v1073_v0  ;;  %450 = vmatprep.mubr.bf16.mxu1 %v1073_v0  ;;  %v1224_v6 = vld [vmem:[%s1347_s4] sm:$0xff]  ;;  %v1240_v10 = vld [vmem:[%s1347_s4 + $0x18] sm:$0xff]  ;;  %v971_v11 = vld [vmem:[%s1344_s1 + $0x8] sm:$0xff]   ;;  %v1075_v55 = vmov 2   ;;  %s911_s17 = sshll.u32 %s1129_s22, 7  ;;  %s240_s23 = scalar_lea.vmem [#allocation5], %s878_s11 }
  0x37   : > { %881 = vmatprep.subr.msk.bf16.mxu0 %vm293_vm0, %v247_v3  ;;  %v295_v7 = vsel %vm293_vm0, %v246_v4, 0  ;;  %258 = vperm.xlu1 %963, %v1224_v6   ;;  %v972_v53 = vld [vmem:[%s1345_s2] sm:$0xff]   ;;  %v973_v54 = vld [vmem:[%s1345_s2 + $0x8] sm:$0xff]   ;;  %s800_s25 = sshll.u32 %s240_s23, 4  ;;  %s1300_s29 = scalar_lea.hbm %s1348_s5, %s911_s17  ;;  %s1302_s25 = int_to_ptr.vmem [resolvable:$true] %s800_s25 }
  0x38   : > { %315 = vmatpush1.bf16.msra.mxu0 %v295_v7  ;;  %268 = vperm.xlu0 %962, %v1235_v9   ;;  %s786_s15 = scalar_lea.sflag [#allocation4], %s1206_s13  ;;  %s1006_s16 = scalar_lea.vmem %s1302_s25, 128 }
  0x39   : > { %p1007_p11 = scmp.ne.s32.totalorder %s1302_s25, %s1006_s16  ;;  %p1359_p12 = scmp.ne.s32.totalorder %s1353_s30, 0 }
  0x3a   : > { %s1077_s22 = smov [#allocation5]  }
  0x3b   : > { %882 = vmatmul.mubr.msk.bf16.vlgmr.msra.gmra.mxu0 %vm286_vm1, %v970_v5  ;;  %263 = vperm.xlu1 %963, %v1230_v8   ;;  %p1008_p13 = pnand %p1007_p11, %p1359_p12  ;;  %s1010_s26 = sshll.u32 %s1077_s22, 4  ;;  %s1011_s26 = int_to_ptr.vmem [resolvable:$false] %s1010_s26 }
  0x3c   : > { %342 = vmatprep.mubr.bf16.mxu0 %v1073_v0  ;;  %273 = vperm.xlu0 %962, %v1240_v10   ;;  %s1012_s28 = scalar_lea.vmem %s1011_s26, 256  ;;  %p1013_p3 = scmp.lt.s32.totalorder %s1302_s25, %s1011_s26 }
  0x3d   : > { %p1009_p1 = pneg %p1008_p13  ;;  %p1014_p5 = scmp.lt.s32.totalorder %s1012_s28, %s1006_s16 }
  0x3f   : > { %965 = vset.pattern.permute.xlu1 %v1074_v12  ;;  %p1015_p8 = por %p1014_p5, %p1013_p3 }
  0x40   : > { %964 = vset.pattern.permute.xlu0 %v1074_v12  ;;  %398 = vperm.xlu1 %965, %v1240_v10  }
  0x41   : > { %394 = vperm.xlu0 %964, %v1235_v9   ;;  %p1016_p10 = pnand %p1015_p8, %p1009_p1 }
  0x43   : > { %883 = vmatmul.mubr.msk.bf16.gmra.mxu0 %vm286_vm1, %v971_v11 }
  0x44   : > { %568 = vmatprep.mubr.bf16.mxu0 %v1073_v0  ;;  %386 = vperm.xlu1 %965, %v1224_v6  }
  0x45   : > { %390 = vperm.xlu0 %964, %v1230_v8  }
  0x48   : > { %966 = vset.pattern.permute.xlu1 %v1075_v55 }
  0x49   : > { %967 = vset.pattern.permute.xlu0 %v1075_v55  ;;  %513 = vperm.xlu1 %966, %v1235_v9  }
  0x4a   : > { %517 = vperm.xlu0 %967, %v1240_v10  }
  0x4d   : > { %505 = vperm.xlu1 %966, %v1224_v6  }
  0x51   : > { %509 = vperm.xlu1 %966, %v1230_v8  }
  0xb2   : > { %v259_v15 = vpop.permute.xlu1 %258 }
  0xb3   : > { %v269_v17 = vpop.permute.xlu0 %268 }
  0xb6   : > { %v264_v20 = vpop.permute.xlu1 %263 }
  0xb7   : > { %v274_v25 = vpop.permute.xlu0 %273 }
  0xbb   : > { %v399_v60 = vpop.permute.xlu1 %398 }
  0xbc   : > { %v395_v58 = vpop.permute.xlu0 %394 }
  0xbf   : > { %v387_v4 = vpop.permute.xlu1 %386 }
  0xc0   : > { %v391_v63 = vpop.permute.xlu0 %390 }
  0xfb   : > { %v334_v13 = vpop.f32.mrf.mxu0 }
  0xfc   : > { %v335_v35 = vadd.f32 %v334_v13, %v259_v15 }
  0xfd   : > { %v336_v14 = vpop.f32.mrf.mxu0 }
  0xfe   : > { %v337_v27 = vadd.f32 %v336_v14, %v259_v15  ;;  %v361_v44 = vmul.f32 0.01, %v335_v35  ;;  %vm353_vm9 = vcmp.gt.f32.partialorder %v335_v35, 0.0 }
  0xff   : > { %v338_v16 = vpop.f32.mrf.mxu0 }
 0x100   : > { %v339_v29 = vadd.f32 %v338_v16, %v264_v20  ;;  %v362_v37 = vmul.f32 0.01, %v337_v27  ;;  %vm354_vm7 = vcmp.gt.f32.partialorder %v337_v27, 0.0  ;;  %v369_v51 = vsel %vm353_vm9, %v335_v35, %v361_v44 }
 0x101   : > { %v340_v18 = vpop.f32.mrf.mxu0 }
 0x102   : > { %v341_v21 = vadd.f32 %v340_v18, %v264_v20  ;;  %v363_v39 = vmul.f32 0.01, %v339_v29  ;;  %vm355_vm8 = vcmp.gt.f32.partialorder %v339_v29, 0.0  ;;  %v370_v48 = vsel %vm354_vm7, %v337_v27, %v362_v37  ;;  %v974_v37 = vld [vmem:[%s1345_s2 + $0x10] sm:$0xff]  }
 0x103   : > { %v344_v19 = vpop.f32.mrf.mxu0 }
 0x104   : > { %v345_v24 = vadd.f32 %v344_v19, %v269_v17  ;;  %v364_v30 = vmul.f32 0.01, %v341_v21  ;;  %vm356_vm3 = vcmp.gt.f32.partialorder %v341_v21, 0.0  ;;  %v371_v50 = vsel %vm355_vm8, %v339_v29, %v363_v39 }
 0x105   : > { %v346_v22 = vpop.f32.mrf.mxu0  ;;  %v381_v52 = vpack.c.bf16 %v371_v50, %v369_v51  ;;  %v1076_v39 = vmov 3   ;;  %v518_v50 = vpop.permute.xlu0 %517 }
 0x106   : > { %v347_v23 = vadd.f32 %v346_v22, %v269_v17  ;;  %v365_v36 = vmul.f32 0.01, %v345_v24  ;;  %vm357_vm6 = vcmp.gt.f32.partialorder %v345_v24, 0.0  ;;  %v372_v43 = vsel %vm356_vm3, %v341_v21, %v364_v30  ;;  %969 = vset.pattern.permute.xlu1 %v1076_v39  ;;  %968 = vset.pattern.permute.xlu0 %v1076_v39 }
 0x107   : > { %v348_v26 = vpop.f32.mrf.mxu0  ;;  %v382_v49 = vpack.c.bf16 %v372_v43, %v370_v48  ;;  %635 = vperm.xlu1 %969, %v1240_v10   ;;  %631 = vperm.xlu0 %968, %v1235_v9  }
 0x108   : > { %v349_v28 = vadd.f32 %v348_v26, %v274_v25  ;;  %v366_v32 = vmul.f32 0.01, %v347_v23  ;;  %vm358_vm4 = vcmp.gt.f32.partialorder %v347_v23, 0.0  ;;  %v373_v46 = vsel %vm357_vm6, %v345_v24, %v365_v36 }
 0x109   : > { %v350_v31 = vpop.f32.mrf.mxu0 }
 0x10a   : > { %v367_v33 = vmul.f32 0.01, %v349_v28  ;;  %v351_v34 = vadd.f32 %v350_v31, %v274_v25  ;;  %vm359_vm2 = vcmp.gt.f32.partialorder %v349_v28, 0.0  ;;  %v374_v41 = vsel %vm358_vm4, %v347_v23, %v366_v32 }
 0x10b   : > { %623 = vperm.xlu1 %969, %v1224_v6   ;;  %627 = vperm.xlu0 %968, %v1230_v8  }
 0x10c   : > { %v368_v38 = vmul.f32 0.01, %v351_v34  ;;  %vm360_vm5 = vcmp.gt.f32.partialorder %v351_v34, 0.0  ;;  %v375_v40 = vsel %vm359_vm2, %v349_v28, %v367_v33 }
 0x10d   : > { %v383_v47 = vpack.c.bf16 %v375_v40, %v373_v46  ;;  %v514_v40 = vpop.permute.xlu1 %513 }
 0x10e   : > { %v376_v42 = vsel %vm360_vm5, %v351_v34, %v368_v38  ;;  %v975_v38 = vld [vmem:[%s1345_s2 + $0x18] sm:$0xff]  }
 0x10f   : > { %v384_v45 = vpack.c.bf16 %v376_v42, %v374_v41 }
 0x111   : > { %430 = vmatprep.subr.bf16.mxu1 %v384_v45  ;;  %v506_v43 = vpop.permute.xlu1 %505 }
 0x112   : > { %431 = vmatpush1.bf16.msra.mxu1 %v383_v47 }
 0x113   : > { %432 = vmatprep.subr.bf16.mxu1 %v382_v49 }
 0x115   : > { %v510_v47 = vpop.permute.xlu1 %509 }
 0x116   : > { %433 = vmatpush1.bf16.msra.mxu1 %v381_v52 }
 0x119   : > { %886 = vmatmul.mubr.msk.bf16.vlgmr.msra.gmra.mxu1 %vm411_vm10, %v972_v53 }
 0x11a   : > { %460 = vmatprep.mubr.bf16.mxu1 %v1073_v0 }
 0x121   : > { %887 = vmatmul.mubr.msk.bf16.gmra.mxu1 %vm411_vm10, %v973_v54 }
 0x122   : > { %686 = vmatprep.mubr.bf16.mxu1 %v1073_v0 }
 0x1d9   : > { %v452_v56 = vpop.f32.mrf.mxu1 }
 0x1da   : > { %v453_v19 = vadd.f32 %v452_v56, %v387_v4 }
 0x1db   : > { %v454_v57 = vpop.f32.mrf.mxu1 }
 0x1dc   : > { %v455_v11 = vadd.f32 %v454_v57, %v387_v4  ;;  %v479_v28 = vmul.f32 0.01, %v453_v19  ;;  %vm471_vm2 = vcmp.gt.f32.partialorder %v453_v19, 0.0 }
 0x1dd   : > { %v456_v59 = vpop.f32.mrf.mxu1 }
 0x1de   : > { %v457_v13 = vadd.f32 %v456_v59, %v391_v63  ;;  %v480_v21 = vmul.f32 0.01, %v455_v11  ;;  %vm472_vm0 = vcmp.gt.f32.partialorder %v455_v11, 0.0  ;;  %v487_v35 = vsel %vm471_vm2, %v453_v19, %v479_v28 }
 0x1df   : > { %v458_v61 = vpop.f32.mrf.mxu1 }
 0x1e0   : > { %v459_v1 = vadd.f32 %v458_v61, %v391_v63  ;;  %v481_v23 = vmul.f32 0.01, %v457_v13  ;;  %vm473_vm1 = vcmp.gt.f32.partialorder %v457_v13, 0.0  ;;  %v488_v32 = vsel %vm472_vm0, %v455_v11, %v480_v21  ;;  %v632_v21 = vpop.permute.xlu0 %631 }
 0x1e1   : > { %v462_v62 = vpop.f32.mrf.mxu1 }
 0x1e2   : > { %v463_v5 = vadd.f32 %v462_v62, %v395_v58  ;;  %v482_v14 = vmul.f32 0.01, %v459_v1  ;;  %vm474_vm12 = vcmp.gt.f32.partialorder %v459_v1, 0.0  ;;  %v489_v33 = vsel %vm473_vm1, %v457_v13, %v481_v23  ;;  %v636_v23 = vpop.permute.xlu1 %635 }
 0x1e3   : > { %v464_v2 = vpop.f32.mrf.mxu1  ;;  %v500_v36 = vpack.c.bf16 %v489_v33, %v487_v35 }
 0x1e4   : > { %v465_v3 = vadd.f32 %v464_v2, %v395_v58  ;;  %v483_v20 = vmul.f32 0.01, %v463_v5  ;;  %vm475_vm14 = vcmp.gt.f32.partialorder %v463_v5, 0.0  ;;  %v490_v27 = vsel %vm474_vm12, %v459_v1, %v482_v14 }
 0x1e5   : > { %v466_v7 = vpop.f32.mrf.mxu1  ;;  %v501_v34 = vpack.c.bf16 %v490_v27, %v488_v32 }
 0x1e6   : > { %v467_v12 = vadd.f32 %v466_v7, %v399_v60  ;;  %v484_v16 = vmul.f32 0.01, %v465_v3  ;;  %vm476_vm13 = vcmp.gt.f32.partialorder %v465_v3, 0.0  ;;  %v491_v29 = vsel %vm475_vm14, %v463_v5, %v483_v20 }
 0x1e7   : > { %v468_v15 = vpop.f32.mrf.mxu1 }
 0x1e8   : > { %vm477_vm11 = vcmp.gt.f32.partialorder %v467_v12, 0.0  ;;  %v485_v17 = vmul.f32 0.01, %v467_v12  ;;  %v469_v18 = vadd.f32 %v468_v15, %v399_v60  ;;  %v492_v25 = vsel %vm476_vm13, %v465_v3, %v484_v16 }
 0x1ea   : > { %vm478_vm15 = vcmp.gt.f32.partialorder %v469_v18, 0.0  ;;  %v486_v22 = vmul.f32 0.01, %v469_v18  ;;  %v493_v24 = vsel %vm477_vm11, %v467_v12, %v485_v17  ;;  %v976_v17 = vld [vmem:[%s1345_s2 + $0x20] sm:$0xff]  }
 0x1eb   : > { %v502_v31 = vpack.c.bf16 %v493_v24, %v491_v29 }
 0x1ec   : > { %v494_v26 = vsel %vm478_vm15, %v469_v18, %v486_v22  ;;  %v977_v18 = vld [vmem:[%s1345_s2 + $0x28] sm:$0xff]  }
 0x1ed   : > { %v503_v30 = vpack.c.bf16 %v494_v26, %v492_v25  ;;  %v628_v26 = vpop.permute.xlu0 %627 }
 0x1ef   : > { %548 = vmatprep.subr.bf16.mxu0 %v503_v30  ;;  %v624_v30 = vpop.permute.xlu1 %623 }
 0x1f0   : > { %549 = vmatpush1.bf16.msra.mxu0 %v502_v31 }
 0x1f1   : > { %550 = vmatprep.subr.bf16.mxu0 %v501_v34 }
 0x1f4   : > { %551 = vmatpush1.bf16.msra.mxu0 %v500_v36 }
 0x1f7   : > { %894 = vmatmul.mubr.msk.bf16.vlgmr.msra.gmra.mxu0 %vm411_vm10, %v974_v37 }
 0x1f8   : > { %578 = vmatprep.mubr.bf16.mxu0 %v1073_v0 }
 0x1ff   : > { %895 = vmatmul.mubr.msk.bf16.gmra.mxu0 %vm411_vm10, %v975_v38 }
 0x200   : > { %771 = vmatprep.mubr.bf16.mxu0 %v1073_v0 }
 0x2b7   : > { %v570_v41 = vpop.f32.mrf.mxu0 }
 0x2b8   : > { %v571_v58 = vadd.f32 %v570_v41, %v506_v43 }
 0x2b9   : > { %v572_v42 = vpop.f32.mrf.mxu0 }
 0x2ba   : > { %v573_v53 = vadd.f32 %v572_v42, %v506_v43  ;;  %v597_v4 = vmul.f32 0.01, %v571_v58  ;;  %vm589_vm11 = vcmp.gt.f32.partialorder %v571_v58, 0.0 }
 0x2bb   : > { %v574_v44 = vpop.f32.mrf.mxu0 }
 0x2bc   : > { %v575_v54 = vadd.f32 %v574_v44, %v510_v47  ;;  %v598_v60 = vmul.f32 0.01, %v573_v53  ;;  %vm590_vm8 = vcmp.gt.f32.partialorder %v573_v53, 0.0  ;;  %v605_v15 = vsel %vm589_vm11, %v571_v58, %v597_v4 }
 0x2bd   : > { %v576_v45 = vpop.f32.mrf.mxu0 }
 0x2be   : > { %v577_v48 = vadd.f32 %v576_v45, %v510_v47  ;;  %v599_v62 = vmul.f32 0.01, %v575_v54  ;;  %vm591_vm9 = vcmp.gt.f32.partialorder %v575_v54, 0.0  ;;  %v606_v12 = vsel %vm590_vm8, %v573_v53, %v598_v60 }
 0x2bf   : > { %v580_v46 = vpop.f32.mrf.mxu0 }
 0x2c0   : > { %v581_v52 = vadd.f32 %v580_v46, %v514_v40  ;;  %v600_v6 = vmul.f32 0.01, %v577_v48  ;;  %vm592_vm4 = vcmp.gt.f32.partialorder %v577_v48, 0.0  ;;  %v607_v13 = vsel %vm591_vm9, %v575_v54, %v599_v62 }
 0x2c1   : > { %v582_v49 = vpop.f32.mrf.mxu0  ;;  %v618_v16 = vpack.c.bf16 %v607_v13, %v605_v15 }
 0x2c2   : > { %v583_v51 = vadd.f32 %v582_v49, %v514_v40  ;;  %v601_v59 = vmul.f32 0.01, %v581_v52  ;;  %vm593_vm6 = vcmp.gt.f32.partialorder %v581_v52, 0.0  ;;  %v608_v3 = vsel %vm592_vm4, %v577_v48, %v600_v6 }
 0x2c3   : > { %v584_v10 = vpop.f32.mrf.mxu0  ;;  %v619_v14 = vpack.c.bf16 %v608_v3, %v606_v12 }
 0x2c4   : > { %v585_v9 = vadd.f32 %v584_v10, %v518_v50  ;;  %v602_v8 = vmul.f32 0.01, %v583_v51  ;;  %vm594_vm5 = vcmp.gt.f32.partialorder %v583_v51, 0.0  ;;  %v609_v5 = vsel %vm593_vm6, %v581_v52, %v601_v59 }
 0x2c5   : > { %v586_v55 = vpop.f32.mrf.mxu0 }
 0x2c6   : > { %vm595_vm3 = vcmp.gt.f32.partialorder %v585_v9, 0.0  ;;  %v603_v56 = vmul.f32 0.01, %v585_v9  ;;  %v587_v57 = vadd.f32 %v586_v55, %v518_v50  ;;  %v610_v1 = vsel %vm594_vm5, %v583_v51, %v602_v8  ;;  %v731_v55 = vld [vmem:[%s1346_s3] sm:$0x3] }
 0x2c8   : > { %vm596_vm7 = vcmp.gt.f32.partialorder %v587_v57, 0.0  ;;  %v604_v61 = vmul.f32 0.01, %v587_v57  ;;  %v611_v63 = vsel %vm595_vm3, %v585_v9, %v603_v56 }
 0x2c9   : > { %v620_v11 = vpack.c.bf16 %v611_v63, %v609_v5 }
 0x2ca   : > { %v612_v2 = vsel %vm596_vm7, %v587_v57, %v604_v61 }
 0x2cb   : > { %v621_v7 = vpack.c.bf16 %v612_v2, %v610_v1 }
 0x2cd   : > { %666 = vmatprep.subr.bf16.mxu1 %v621_v7 }
 0x2ce   : > { %667 = vmatpush1.bf16.msra.mxu1 %v620_v11 }
 0x2cf   : > { %668 = vmatprep.subr.bf16.mxu1 %v619_v14 }
 0x2d2   : > { %669 = vmatpush1.bf16.msra.mxu1 %v618_v16 }
 0x2d5   : > { %902 = vmatmul.mubr.msk.bf16.vlgmr.msra.gmra.mxu1 %vm411_vm10, %v976_v17 }
 0x2d6   : > { %696 = vmatprep.mubr.bf16.mxu1 %v1073_v0 }
 0x2dd   : > { %903 = vmatmul.mubr.msk.bf16.gmra.mxu1 %vm411_vm10, %v977_v18 }
 0x395   : > { %v688_v19 = vpop.f32.mrf.mxu1 }
 0x396   : > { %v689_v40 = vadd.f32 %v688_v19, %v624_v30 }
 0x397   : > { %v690_v20 = vpop.f32.mrf.mxu1 }
 0x398   : > { %v691_v32 = vadd.f32 %v690_v20, %v624_v30  ;;  %v715_v49 = vmul.f32 0.01, %v689_v40  ;;  %vm707_vm3 = vcmp.gt.f32.partialorder %v689_v40, 0.0 }
 0x399   : > { %v692_v22 = vpop.f32.mrf.mxu1 }
 0x39a   : > { %v693_v34 = vadd.f32 %v692_v22, %v628_v26  ;;  %v716_v42 = vmul.f32 0.01, %v691_v32  ;;  %vm708_vm1 = vcmp.gt.f32.partialorder %v691_v32, 0.0  ;;  %v723_v54 = vsel %vm707_vm3, %v689_v40, %v715_v49 }
 0x39b   : > { %v694_v24 = vpop.f32.mrf.mxu1 }
 0x39c   : > { %v695_v27 = vadd.f32 %v694_v24, %v628_v26  ;;  %v717_v44 = vmul.f32 0.01, %v693_v34  ;;  %vm709_vm2 = vcmp.gt.f32.partialorder %v693_v34, 0.0  ;;  %v724_v10 = vsel %vm708_vm1, %v691_v32, %v716_v42 }
 0x39d   : > { %v698_v25 = vpop.f32.mrf.mxu1 }
 0x39e   : > { %v699_v31 = vadd.f32 %v698_v25, %v632_v21  ;;  %v718_v35 = vmul.f32 0.01, %v695_v27  ;;  %vm710_vm13 = vcmp.gt.f32.partialorder %v695_v27, 0.0  ;;  %v725_v53 = vsel %vm709_vm2, %v693_v34, %v717_v44 }
 0x39f   : > { %v700_v28 = vpop.f32.mrf.mxu1  ;;  %v732_v6 = vpack.c.bf16 %v725_v53, %v723_v54 }
 0x3a0   : > { %v701_v29 = vadd.f32 %v700_v28, %v632_v21  ;;  %v719_v41 = vmul.f32 0.01, %v699_v31  ;;  %vm711_vm15 = vcmp.gt.f32.partialorder %v699_v31, 0.0  ;;  %v726_v48 = vsel %vm710_vm13, %v695_v27, %v718_v35 }
 0x3a1   : > { %v702_v0 = vpop.f32.mrf.mxu1  ;;  %v733_v9 = vpack.c.bf16 %v726_v48, %v724_v10 }
 0x3a2   : > { %v703_v33 = vadd.f32 %v702_v0, %v636_v23  ;;  %v720_v37 = vmul.f32 0.01, %v701_v29  ;;  %vm712_vm14 = vcmp.gt.f32.partialorder %v701_v29, 0.0  ;;  %v727_v50 = vsel %vm711_vm15, %v699_v31, %v719_v41 }
 0x3a3   : > { %v704_v36 = vpop.f32.mrf.mxu1 }
 0x3a4   : > { %vm713_vm12 = vcmp.gt.f32.partialorder %v703_v33, 0.0  ;;  %v721_v38 = vmul.f32 0.01, %v703_v33  ;;  %v705_v39 = vadd.f32 %v704_v36, %v636_v23  ;;  %v728_v46 = vsel %vm712_vm14, %v701_v29, %v720_v37 }
 0x3a6   : > { %vm714_vm0 = vcmp.gt.f32.partialorder %v705_v39, 0.0  ;;  %v722_v43 = vmul.f32 0.01, %v705_v39  ;;  %v729_v45 = vsel %vm713_vm12, %v703_v33, %v721_v38 }
 0x3a7   : > { %v734_v52 = vpack.c.bf16 %v729_v45, %v727_v50 }
 0x3a8   : > { %v730_v47 = vsel %vm714_vm0, %v705_v39, %v722_v43 }
 0x3a9   : > { %v735_v51 = vpack.c.bf16 %v730_v47, %v728_v46 }
 0x3ab   : > { %751 = vmatprep.subr.bf16.mxu0 %v735_v51 }
 0x3ac   : > { %752 = vmatpush1.bf16.msra.mxu0 %v734_v52 }
 0x3ad   : > { %753 = vmatprep.subr.bf16.mxu0 %v733_v9 }
 0x3b0   : > { %754 = vmatpush1.bf16.msra.mxu0 %v732_v6 }
 0x3b3   : > { %904 = vmatmul.mubr.msk.bf16.vlgmr.msra.gmra.mxu0 %vm411_vm10, %v731_v55 }
 0x473   : > { %v773_v8 = vpop.f32.mrf.mxu0 }
 0x475   : > { %v775_v56 = vpop.f32.mrf.mxu0 }
 0x476   : > { %v782_v57 = vcombine.low %v773_v8, %v775_v56 }
 0x477   : > { %v777_v58 = vpop.f32.mrf.mxu0 }
 0x478   : > { %784 = vst [vmem:[%s240_s23] sm:$0xff] %v782_v57 }
 0x479   : > { %v778_v59 = vpop.f32.mrf.mxu0 }
 0x47a   : > { %1019 = shalt.err (!%p1016_p10)
}
 0x47b   : > { %s1020_s8 = scalar_lea.hbm %s1300_s29, 128  ;;  %s1024_s9 = scalar_lea.hbm %s1348_s5, 256 }
 0x47c   : > { %p1021_p2 = scmp.ne.s32.totalorder %s1300_s29, %s1020_s8  ;;  %p1025_p7 = scmp.lt.s32.totalorder %s1300_s29, %s1348_s5 }
 0x47d   : > { %p1026_p0 = scmp.lt.s32.totalorder %s1024_s9, %s1020_s8 }
 0x47e   : > { %p1022_p4 = pnand %p1021_p2, %p1359_p12 }
 0x47f   : > { %p1027_p6 = por %p1026_p0, %p1025_p7 }
 0x480   : > { %p1023_p9 = pneg %p1022_p4 }
 0x482   : > { %p1028_p11 = pnand %p1027_p6, %p1023_p9 }
 0x484   : > { %1031 = shalt.err (!%p1028_p11)
}
 0x485   : > { %914 = dma.vmem_to_hbm [thread:$0]  (%p1359_p12), %s1302_s25, 128, %s1300_s29, %s786_s15  }
 0x486 PF: > { %s812_s17 = sand.u32 1, %s1058_s18   ;;  %p1360_p13 = scmp.ne.s32.totalorder %s1354_s6, 0 }
 0x487   : > { %p1361_p1 = scmp.ge.s32.totalorder %s1070_s21, 2  ;;  %s813_s23 = scalar_lea.sflag [#allocation4], %s812_s17 }
 0x489   : > { %p921_p3 = pnand %p1361_p1, %p1360_p13 }
 0x48b   : > { %p922_p5 = pneg %p921_p3 }
 0x48d   : > { %1053 = dma.done.wait (%p922_p5), %s813_s23, 128  }
 0x48e   : > { %1055 = vsyncadd (%p922_p5), %s813_s23, 4294967168  ;;  %p18_p8 = scmp.ge.s32.totalorder %s1133_s24, 4   ;;  %s1362_s18 = smov %s1062_s19 }
 0x48f   : > { %s1363_s19 = smov %s1066_s20  ;;  %s1364_s20 = smov %s1145_s27 }
 0x490   : > { %s1365_s21 = smov %s1133_s24  ;;  %20 = sbr.rel (!%p18_p8) target bundleno = 5 (0x5), region = 87 }
 0x495   :  { %818 = vsyncpa [#allocation3], 1 }
 0x496   :  { %820 = vsyncpa [#allocation3 + $0x1], 1 }
 0x497   :  { %821 = vsyncpa [#allocation4], 1 }
 0x498   :  { %823 = vsyncpa [#allocation4 + $0x1], 1 }

</bundles_post_ra>
